<compile_context>
chip_gen: v7x
topology: tpu7x:2x2x1
jax: 0.10.0
libtpu: 0.0.40
codegen_flags: <defaults>
</compile_context>

<pallas_src>
import jax
import jax.numpy as jnp
from jax.experimental import pallas as pl
from jax.experimental.pallas import tpu as pltpu

INPUT_SIZE = 7
HIDDEN_SIZE = 30
OUT_SIZE = 6

LANE = 128                       # one gate stripe per 128-lane block
GATE_W = 4 * LANE                # r | z | i_n | h_n  -> 512 lanes
HEAD_W = LANE                    # padded linear head -> 128 lanes
W_COLS = GATE_W + HEAD_W         # 640
K_PAD = 128                      # padded contraction dim for [x|h|1] (37 -> 128)
BIAS_ROW = K_PAD - 1             # contraction row that carries the gate biases


def vgru_kernel(in_ref, w_ref, out_ref):
    """Fused GRU cell (PyTorch gate order r, z, n) + Linear head.

    in_ref : (8, 128)   row 0 = [x | h | 0... | 1] (x: lanes 0..6, h: 7..36,
                        constant 1.0 in lane 127 feeding the bias row),
                        row 1 = h (lanes 0..29), row 2 = linear-head bias
                        (lanes 0..5).
    w_ref  : (128, 640) cols 0..511 = gate weights + biases (4 stripes),
                        cols 512..639 = linear head weights.
    out_ref: (1, 128)   prediction in lanes 0..5.
    """
    f32 = jnp.float32
    xh = in_ref[0:1, :]                    # (1, 128) [x | h | 1]
    h = in_ref[1:2, :]                     # (1, 128), zeros beyond lane 29
    b_head = in_ref[2:3, :]                # (1, 128) head bias, zeros beyond 5

    # One MXU pass -> all four gate pre-activations, biases included via the
    # constant-1 lane hitting the bias row of W.
    g = jnp.dot(xh, w_ref[:, 0:GATE_W], preferred_element_type=f32)  # (1, 512)

    r = jax.nn.sigmoid(g[:, 0:LANE])                       # reset gate
    z = jax.nn.sigmoid(g[:, LANE:2 * LANE])                # update gate
    # candidate: (W_in x + b_in) + r * (W_hn h + b_hn)
    n = jnp.tanh(g[:, 2 * LANE:3 * LANE] + r * g[:, 3 * LANE:4 * LANE])

    h_new = (1.0 - z) * n + z * h          # padded lanes stay exactly 0

    # Fused linear head (second MXU pass), lane-dense 128-wide store.
    out_ref[...] = (jnp.dot(h_new, w_ref[:, GATE_W:W_COLS],
                            preferred_element_type=f32)
                    + b_head).astype(out_ref.dtype)


def prepare_params(params):
    """One-time packing of PyTorch-layout params into lane-aligned slabs.

    Weight-slab rows: 0..6 -> x features, 7..36 -> h features, 127 -> biases.
    Column stripes (128 lanes each): [r | z | i_n | h_n | linear head].
    Also builds the static part of the (8,128) input slab (constant-1 bias
    lane + linear-head bias row) so the hot path only writes x and h.
    """
    H, IN, OUT = HIDDEN_SIZE, INPUT_SIZE, OUT_SIZE
    w_ih, w_hh = params["w_ih"], params["w_hh"]           # (3H, IN), (3H, H)
    b_ih, b_hh = params["b_ih"], params["b_hh"]           # (3H,), (3H,)

    w_ir, w_iz, w_in = w_ih[:H], w_ih[H:2 * H], w_ih[2 * H:]
    w_hr, w_hz, w_hn = w_hh[:H], w_hh[H:2 * H], w_hh[2 * H:]
    b_ir, b_iz, b_in = b_ih[:H], b_ih[H:2 * H], b_ih[2 * H:]
    b_hr, b_hz, b_hn = b_hh[:H], b_hh[H:2 * H], b_hh[2 * H:]

    W = jnp.zeros((K_PAD, W_COLS), jnp.float32)
    # stripe 0: r gate (x rows + h rows + fused bias row)
    W = W.at[0:IN, 0:H].set(w_ir.T)
    W = W.at[IN:IN + H, 0:H].set(w_hr.T)
    W = W.at[BIAS_ROW, 0:H].set(b_ir + b_hr)
    # stripe 1: z gate
    W = W.at[0:IN, LANE:LANE + H].set(w_iz.T)
    W = W.at[IN:IN + H, LANE:LANE + H].set(w_hz.T)
    W = W.at[BIAS_ROW, LANE:LANE + H].set(b_iz + b_hz)
    # stripe 2: i_n (x rows only, bias b_in)
    W = W.at[0:IN, 2 * LANE:2 * LANE + H].set(w_in.T)
    W = W.at[BIAS_ROW, 2 * LANE:2 * LANE + H].set(b_in)
    # stripe 3: h_n (h rows only, bias b_hn)
    W = W.at[IN:IN + H, 3 * LANE:3 * LANE + H].set(w_hn.T)
    W = W.at[BIAS_ROW, 3 * LANE:3 * LANE + H].set(b_hn)
    # head stripe: rows are h_new lanes (0..29)
    W = W.at[0:H, GATE_W:GATE_W + OUT].set(params["w_lin"].T)

    # Static part of the per-call input slab.
    T = jnp.zeros((8, LANE), jnp.float32)
    T = T.at[0, BIAS_ROW].set(1.0)                        # constant-1 bias lane
    T = T.at[2, 0:OUT].set(params["b_lin"])               # linear-head bias row

    return {"W": W, "in_template": T}


def vgru_forward(seq, h0, packed):
    """Hot path: write x and h into the prepacked (8,128) slab, run the kernel."""
    x = seq.reshape(INPUT_SIZE).astype(jnp.float32)
    h = h0.reshape(HIDDEN_SIZE).astype(jnp.float32)

    slab = packed["in_template"]
    slab = slab.at[0, 0:INPUT_SIZE].set(x)                          # x of [x|h|1]
    slab = slab.at[0, INPUT_SIZE:INPUT_SIZE + HIDDEN_SIZE].set(h)   # h of [x|h|1]
    slab = slab.at[1, 0:HIDDEN_SIZE].set(h)                         # h for state update

    vmem = pl.BlockSpec(memory_space=pltpu.MemorySpace.VMEM)
    out = pl.pallas_call(
        vgru_kernel,
        out_shape=jax.ShapeDtypeStruct((1, LANE), jnp.float32),
        in_specs=[vmem, vmem],
        out_specs=vmem,
    )(slab, packed["W"])
    return out[0, :OUT_SIZE]                               # pred[-1] -> (6,)
    # TODO(synk): if multiple sequences/timesteps are ever processed, batch them
    # into the sublane (M) dimension and add a "parallel" grid axis.


def vgru_reference(seq, h0, params):
    """Pure-JAX reference of the PyTorch forward for correctness checking."""
    H = HIDDEN_SIZE
    x = seq.reshape(1, INPUT_SIZE).astype(jnp.float32)
    h = h0.reshape(1, H).astype(jnp.float32)
    w_ih, w_hh, b_ih, b_hh = (params["w_ih"], params["w_hh"],
                              params["b_ih"], params["b_hh"])
    gi = x @ w_ih.T + b_ih
    gh = h @ w_hh.T + b_hh
    i_r, i_z, i_n = gi[:, :H], gi[:, H:2 * H], gi[:, 2 * H:]
    h_r, h_z, h_n = gh[:, :H], gh[:, H:2 * H], gh[:, 2 * H:]
    r = jax.nn.sigmoid(i_r + h_r)
    z = jax.nn.sigmoid(i_z + h_z)
    n = jnp.tanh(i_n + r * h_n)
    h_new = (1.0 - z) * n + z * h
    pred = h_new @ params["w_lin"].T + params["b_lin"]
    return pred[0]


def init_params(key):
    """Deterministic init matching PyTorch layer shapes (uniform ±1/sqrt(H))."""
    k = 1.0 / jnp.sqrt(jnp.float32(HIDDEN_SIZE))
    keys = jax.random.split(key, 6)
    u = lambda kk, shape: jax.random.uniform(kk, shape, jnp.float32, -k, k)
    return {
        "w_ih": u(keys[0], (3 * HIDDEN_SIZE, INPUT_SIZE)),
        "w_hh": u(keys[1], (3 * HIDDEN_SIZE, HIDDEN_SIZE)),
        "b_ih": u(keys[2], (3 * HIDDEN_SIZE,)),
        "b_hh": u(keys[3], (3 * HIDDEN_SIZE,)),
        "w_lin": u(keys[4], (OUT_SIZE, HIDDEN_SIZE)),
        "b_lin": u(keys[5], (OUT_SIZE,)),
    }


if __name__ == "__main__":
    key = jax.random.PRNGKey(0)
    pkey, xkey = jax.random.split(key)
    params = init_params(pkey)
    packed = jax.block_until_ready(prepare_params(params))   # one-time packing

    seq = jax.random.normal(xkey, (INPUT_SIZE,), jnp.float32)  # len(seq) == input_size
    h0 = jnp.zeros((1, 1, HIDDEN_SIZE), jnp.float32)           # self.hidden

    forward = jax.jit(vgru_forward)
    out = forward(seq, h0, packed)
    out = jax.block_until_ready(out)

    ref = vgru_reference(seq, h0, params)
    assert out.shape == (OUT_SIZE,)
    assert jnp.allclose(out, ref, atol=1e-5, rtol=1e-5), (out, ref)
    print("KERNEL_OK")
</pallas_src>

<mosaic_0001>
module attributes {stable_mosaic.version = 11 : i64} {
  func.func @vgru_kernel(%arg0: memref<8x128xf32, #tpu.memory_space<vmem>>, %arg1: memref<128x640xf32, #tpu.memory_space<vmem>>, %arg2: memref<1x128xf32, #tpu.memory_space<vmem>>) attributes {dimension_semantics = [], scalar_prefetch = 0 : i64, scratch_operands = 0 : i64, tpu.core_type = #tpu.core_type<tc>} {
    %c0 = arith.constant 0 : index
    %c0_0 = arith.constant 0 : index
    %0 = vector.load %arg0[%c0, %c0_0] : memref<8x128xf32, #tpu.memory_space<vmem>>, vector<1x128xf32>
    %c1 = arith.constant 1 : index
    %c0_1 = arith.constant 0 : index
    %1 = vector.load %arg0[%c1, %c0_1] : memref<8x128xf32, #tpu.memory_space<vmem>>, vector<1x128xf32>
    %c2 = arith.constant 2 : index
    %c0_2 = arith.constant 0 : index
    %2 = vector.load %arg0[%c2, %c0_2] : memref<8x128xf32, #tpu.memory_space<vmem>>, vector<1x128xf32>
    %c0_3 = arith.constant 0 : index
    %c0_4 = arith.constant 0 : index
    %3 = vector.load %arg1[%c0_3, %c0_4] : memref<128x640xf32, #tpu.memory_space<vmem>>, vector<128x512xf32>
    %cst = arith.constant dense<0.000000e+00> : vector<1x512xf32>
    %4 = tpu.matmul %0, %3, %cst {dimension_numbers = #tpu.dot_dimension_numbers<[1], [0], [0], [1], [0, 0, 1, 1], [], []>} : vector<1x128xf32>, vector<128x512xf32>, vector<1x512xf32> -> vector<1x512xf32>
    %5 = vector.extract_strided_slice %4 {offsets = [0, 0], sizes = [1, 128], strides = [1, 1]} : vector<1x512xf32> to vector<1x128xf32>
    %6 = arith.negf %5 : vector<1x128xf32>
    %7 = math.exp %6 : vector<1x128xf32>
    %cst_5 = arith.constant 1.000000e+00 : f32
    %8 = vector.broadcast %cst_5 : f32 to vector<1x128xf32>
    %9 = arith.addf %8, %7 : vector<1x128xf32>
    %10 = arith.divf %8, %9 : vector<1x128xf32>
    %11 = vector.extract_strided_slice %4 {offsets = [0, 128], sizes = [1, 128], strides = [1, 1]} : vector<1x512xf32> to vector<1x128xf32>
    %12 = arith.negf %11 : vector<1x128xf32>
    %13 = math.exp %12 : vector<1x128xf32>
    %cst_6 = arith.constant 1.000000e+00 : f32
    %14 = vector.broadcast %cst_6 : f32 to vector<1x128xf32>
    %15 = arith.addf %14, %13 : vector<1x128xf32>
    %16 = arith.divf %14, %15 : vector<1x128xf32>
    %17 = vector.extract_strided_slice %4 {offsets = [0, 256], sizes = [1, 128], strides = [1, 1]} : vector<1x512xf32> to vector<1x128xf32>
    %18 = vector.extract_strided_slice %4 {offsets = [0, 384], sizes = [1, 128], strides = [1, 1]} : vector<1x512xf32> to vector<1x128xf32>
    %19 = arith.mulf %10, %18 : vector<1x128xf32>
    %20 = arith.addf %17, %19 : vector<1x128xf32>
    %21 = math.tanh %20 : vector<1x128xf32>
    %cst_7 = arith.constant 1.000000e+00 : f32
    %22 = vector.broadcast %cst_7 : f32 to vector<1x128xf32>
    %23 = arith.subf %22, %16 : vector<1x128xf32>
    %24 = arith.mulf %23, %21 : vector<1x128xf32>
    %25 = arith.mulf %16, %1 : vector<1x128xf32>
    %26 = arith.addf %24, %25 : vector<1x128xf32>
    %c0_8 = arith.constant 0 : index
    %c512 = arith.constant 512 : index
    %27 = vector.load %arg1[%c0_8, %c512] : memref<128x640xf32, #tpu.memory_space<vmem>>, vector<128x128xf32>
    %cst_9 = arith.constant dense<0.000000e+00> : vector<1x128xf32>
    %28 = tpu.matmul %26, %27, %cst_9 {dimension_numbers = #tpu.dot_dimension_numbers<[1], [0], [0], [1], [0, 0, 1, 1], [], []>} : vector<1x128xf32>, vector<128x128xf32>, vector<1x128xf32> -> vector<1x128xf32>
    %29 = arith.addf %28, %2 : vector<1x128xf32>
    %c0_10 = arith.constant 0 : index
    %c0_11 = arith.constant 0 : index
    %30 = vector.load %arg2[%c0_10, %c0_11] : memref<1x128xf32, #tpu.memory_space<vmem>>, vector<1x128xf32>
    tpu.vector_store %arg2[%c0_10, %c0_11], %29 {strides = array<i32>} : memref<1x128xf32, #tpu.memory_space<vmem>>, vector<1x128xf32>,
    return
  }
}

</mosaic_0001>

<bundles_post_ra>
// kernel: vgru_forward.1
= control target key start
LH: loop header
LB: loop body
LE: loop exit
PB: predicated region body
PF: predicated region fallthrough
CT: control target
= control target key end

     0   :  { %7 = vsyncpa [#allocation3], 0  ;;  %s527_s9 = smov [#allocation2]   ;;  %s575_s0 = inlined_call_operand.vmem [shape: f32[8,128], index: 0, kind: input, shape index: {}]   ;;  %s576_s1 = inlined_call_operand.hbm [shape: f32[128,640], index: 1, kind: input, shape index: {}]   ;;  %s577_s2 = inlined_call_operand.vmem [shape: f32[1,128], index: 2, kind: output, shape index: {}]  }
   0x1   :  { %s15_s10 = sshll.u32 %s527_s9, 4  ;;  %s503_s13 = scalar_lea.hbm %s576_s1, 10240  ;;  %s16_s10 = int_to_ptr.vmem [resolvable:$true] %s15_s10 }
   0x2   :  { %p504_p0 = scmp.ne.s32.totalorder %s576_s1, %s503_s13  ;;  %p507_p1 = scmp.lt.u32.totalorder %s503_s13, %s576_s1 }
   0x4   :  { %p509_p2 = pnand %p507_p1, %p504_p0 }
   0x6   :  { %512 = shalt.err (!%p509_p2)
}
   0x7   :  { %s513_s18 = scalar_lea.vmem %s16_s10, 10240  ;;  %p518_p4 = scmp.lt.s32.totalorder %s16_s10, %s16_s10 }
   0x8   :  { %p514_p3 = scmp.ne.s32.totalorder %s16_s10, %s513_s18  ;;  %p519_p5 = scmp.lt.s32.totalorder %s513_s18, %s513_s18 }
   0xa   :  { %p520_p6 = por %p519_p5, %p518_p4 }
   0xc   :  { %p521_p7 = pnand %p520_p6, %p514_p3 }
   0xe   :  { %524 = shalt.err (!%p521_p7)
}
   0xf   :  { %s528_s19 = smov 640   ;;  %s529_s20 = smov 40  }
  0x10   :  { %21 = dma.hbm_to_vmem [thread:$0]  %s576_s1, 10240, %s16_s10, [#allocation3], %s528_s19, %s528_s19, %s529_s20  }
  0x11   :  { %525 = dma.done.wait [#allocation3], 10240  }
  0x12   :  { %526 = vsyncadd [#allocation3], 4294957056  ;;  %v530_v0 = vmov 0.0   ;;  %v29_v1 = vld [vmem:[#allocation2 + $0x8] sm:$0xff]  ;;  %v33_v2 = vld [vmem:[#allocation2 + $0x30] sm:$0xff]  ;;  %vm532_vm0 = vmmov 0  }
  0x13   :  { %156 = vmatprep.mubr.f32.mxu0 %v530_v0  ;;  %227 = vmatprep.mubr.f32.mxu1 %v530_v0  ;;  %v28_v3 = vld [vmem:[#allocation2] sm:$0xff]  ;;  %v399_v4 = vpack.c.bf16 %v33_v2, %v29_v1  ;;  %v32_v5 = vld [vmem:[#allocation2 + $0x28] sm:$0xff]  ;;  %v37_v6 = vld [vmem:[#allocation2 + $0x58] sm:$0xff] }
  0x14   :  { %v41_v7 = vld [vmem:[#allocation2 + $0x80] sm:$0xff]  ;;  %v401_v8 = vpack.c.bf16 %v32_v5, %v28_v3  ;;  %v36_v10 = vld [vmem:[#allocation2 + $0x50] sm:$0xff]  ;;  %v40_v11 = vld [vmem:[#allocation2 + $0x78] sm:$0xff] }
  0x15   :  { %v403_v9 = vpack.c.bf16 %v41_v7, %v37_v6  ;;  %v45_v12 = vld [vmem:[#allocation2 + $0xa8] sm:$0xff]  ;;  %400 = vmatprep.subr.bf16.mxu0 %v399_v4  ;;  %v49_v13 = vld [vmem:[#allocation2 + $0xd0] sm:$0xff]  ;;  %v405_v14 = vpack.c.bf16 %v40_v11, %v36_v10  ;;  %v44_v16 = vld [vmem:[#allocation2 + $0xa0] sm:$0xff] }
  0x16   :  { %402 = vmatpush1.bf16.msra.mxu0 %v401_v8  ;;  %v407_v15 = vpack.c.bf16 %v49_v13, %v45_v12  ;;  %v48_v17 = vld [vmem:[#allocation2 + $0xc8] sm:$0xff]  ;;  %v53_v18 = vld [vmem:[#allocation2 + $0xf8] sm:$0xff]  ;;  %v57_v19 = vld [vmem:[#allocation2 + $0x120] sm:$0xff] }
  0x17   :  { %404 = vmatprep.subr.bf16.mxu0 %v403_v9  ;;  %v409_v20 = vpack.c.bf16 %v48_v17, %v44_v16  ;;  %v52_v21 = vld [vmem:[#allocation2 + $0xf0] sm:$0xff]  ;;  %v31_v22 = vld [vmem:[#allocation2 + $0x18] sm:$0xff]  ;;  %v411_v23 = vpack.c.bf16 %v57_v19, %v53_v18  ;;  %v61_v25 = vld [vmem:[#allocation2 + $0x148] sm:$0xff] }
  0x18   :  { %v56_v24 = vld [vmem:[#allocation2 + $0x118] sm:$0xff]  ;;  %v35_v26 = vld [vmem:[#allocation2 + $0x40] sm:$0xff]  ;;  %v65_v27 = vld [vmem:[#allocation2 + $0x170] sm:$0xff] }
  0x19   :  { %v431_v28 = vpack.c.bf16 %v35_v26, %v31_v22  ;;  %v30_v29 = vld [vmem:[#allocation2 + $0x10] sm:$0xff]  ;;  %v34_v30 = vld [vmem:[#allocation2 + $0x38] sm:$0xff]  ;;  %v60_v31 = vld [vmem:[#allocation2 + $0x140] sm:$0xff]  ;;  %v413_v35 = vpack.c.bf16 %v56_v24, %v52_v21  ;;  %v415_v40 = vpack.c.bf16 %v65_v27, %v61_v25 }
  0x1a   :  { %406 = vmatpush1.bf16.msra.mxu0 %v405_v14  ;;  %v433_v32 = vpack.c.bf16 %v34_v30, %v30_v29  ;;  %v39_v33 = vld [vmem:[#allocation2 + $0x68] sm:$0xff]  ;;  %v43_v34 = vld [vmem:[#allocation2 + $0x90] sm:$0xff]  ;;  %v69_v37 = vld [vmem:[#allocation2 + $0x198] sm:$0xff] }
  0x1b   :  { %408 = vmatprep.subr.bf16.mxu0 %v407_v15  ;;  %v64_v36 = vld [vmem:[#allocation2 + $0x168] sm:$0xff]  ;;  %432 = vmatprep.subr.bf16.mxu1 %v431_v28  ;;  %v435_v38 = vpack.c.bf16 %v43_v34, %v39_v33  ;;  %v38_v39 = vld [vmem:[#allocation2 + $0x60] sm:$0xff]  ;;  %v47_v43 = vld [vmem:[#allocation2 + $0xb8] sm:$0xff] }
  0x1c   :  { %v73_v41 = vld [vmem:[#allocation2 + $0x1c0] sm:$0xff]  ;;  %434 = vmatpush1.bf16.msra.mxu1 %v433_v32  ;;  %v42_v42 = vld [vmem:[#allocation2 + $0x88] sm:$0xff]  ;;  %v46_v46 = vld [vmem:[#allocation2 + $0xb0] sm:$0xff]  ;;  %v417_v51 = vpack.c.bf16 %v64_v36, %v60_v31 }
  0x1d   :  { %436 = vmatprep.subr.bf16.mxu1 %v435_v38  ;;  %v437_v44 = vpack.c.bf16 %v42_v42, %v38_v39  ;;  %v51_v45 = vld [vmem:[#allocation2 + $0xe0] sm:$0xff]  ;;  %v50_v47 = vld [vmem:[#allocation2 + $0xd8] sm:$0xff]  ;;  %v55_v49 = vld [vmem:[#allocation2 + $0x108] sm:$0xff]  ;;  %v419_v52 = vpack.c.bf16 %v73_v41, %v69_v37  ;;  %v531_v38 = vmov 0.0|0.0  }
  0x1e   :  { %410 = vmatpush1.bf16.msra.mxu0 %v409_v20  ;;  %v439_v48 = vpack.c.bf16 %v51_v45, %v47_v43  ;;  %v59_v50 = vld [vmem:[#allocation2 + $0x130] sm:$0xff]  ;;  %v72_v54 = vld [vmem:[#allocation2 + $0x1b8] sm:$0xff]  ;;  %v77_v55 = vld [vmem:[#allocation2 + $0x1e8] sm:$0xff]  ;;  %v441_v56 = vpack.c.bf16 %v50_v47, %v46_v46 }
  0x1f   :  { %412 = vmatprep.subr.bf16.mxu0 %v411_v23  ;;  %v68_v53 = vld [vmem:[#allocation2 + $0x190] sm:$0xff]  ;;  %v443_v58 = vpack.c.bf16 %v59_v50, %v55_v49  ;;  %v54_v59 = vld [vmem:[#allocation2 + $0x100] sm:$0xff]  ;;  %v58_v60 = vld [vmem:[#allocation2 + $0x128] sm:$0xff] }
  0x20   :  { %438 = vmatpush1.bf16.msra.mxu1 %v437_v44  ;;  %v81_v57 = vld [vmem:[#allocation2 + $0x210] sm:$0xff]  ;;  %v63_v61 = vld [vmem:[#allocation2 + $0x158] sm:$0xff]  ;;  %v67_v62 = vld [vmem:[#allocation2 + $0x180] sm:$0xff]  ;;  %v421_v63 = vpack.c.bf16 %v72_v54, %v68_v53  ;;  %v445_v5 = vpack.c.bf16 %v58_v60, %v54_v59 }
  0x21   :  { %440 = vmatprep.subr.bf16.mxu1 %v439_v48  ;;  %v423_v1 = vpack.c.bf16 %v81_v57, %v77_v55  ;;  %v76_v2 = vld [vmem:[#allocation2 + $0x1e0] sm:$0xff]  ;;  %v80_v3 = vld [vmem:[#allocation2 + $0x208] sm:$0xff]  ;;  %v85_v4 = vld [vmem:[#allocation2 + $0x238] sm:$0xff]  ;;  %v447_v7 = vpack.c.bf16 %v67_v62, %v63_v61 }
  0x22   :  { %414 = vmatpush1.bf16.msra.mxu0 %v413_v35  ;;  %v89_v6 = vld [vmem:[#allocation2 + $0x260] sm:$0xff]  ;;  %v62_v8 = vld [vmem:[#allocation2 + $0x150] sm:$0xff]  ;;  %v66_v9 = vld [vmem:[#allocation2 + $0x178] sm:$0xff]  ;;  %v425_v12 = vpack.c.bf16 %v80_v3, %v76_v2 }
  0x23   :  { %416 = vmatprep.subr.bf16.mxu0 %v415_v40  ;;  %v71_v10 = vld [vmem:[#allocation2 + $0x1a8] sm:$0xff]  ;;  %v75_v11 = vld [vmem:[#allocation2 + $0x1d0] sm:$0xff]  ;;  %v427_v13 = vpack.c.bf16 %v89_v6, %v85_v4  ;;  %v88_v15 = vld [vmem:[#allocation2 + $0x258] sm:$0xff]  ;;  %v449_v16 = vpack.c.bf16 %v66_v9, %v62_v8 }
  0x24   :  { %442 = vmatpush1.bf16.msra.mxu1 %v441_v56  ;;  %v84_v14 = vld [vmem:[#allocation2 + $0x230] sm:$0xff]  ;;  %v451_v17 = vpack.c.bf16 %v75_v11, %v71_v10  ;;  %v70_v18 = vld [vmem:[#allocation2 + $0x1a0] sm:$0xff]  ;;  %v74_v19 = vld [vmem:[#allocation2 + $0x1c8] sm:$0xff] }
  0x25   :  { %444 = vmatprep.subr.bf16.mxu1 %v443_v58  ;;  %v79_v20 = vld [vmem:[#allocation2 + $0x1f8] sm:$0xff]  ;;  %v83_v21 = vld [vmem:[#allocation2 + $0x220] sm:$0xff]  ;;  %v429_v22 = vpack.c.bf16 %v88_v15, %v84_v14  ;;  %v453_v23 = vpack.c.bf16 %v74_v19, %v70_v18  ;;  %v78_v25 = vld [vmem:[#allocation2 + $0x1f0] sm:$0xff] }
  0x26   :  { %418 = vmatpush1.bf16.msra.mxu0 %v417_v51  ;;  %v455_v24 = vpack.c.bf16 %v83_v21, %v79_v20  ;;  %v82_v26 = vld [vmem:[#allocation2 + $0x218] sm:$0xff]  ;;  %v87_v27 = vld [vmem:[#allocation2 + $0x248] sm:$0xff]  ;;  %v91_v28 = vld [vmem:[#allocation2 + $0x270] sm:$0xff] }
  0x27   :  { %420 = vmatprep.subr.bf16.mxu0 %v419_v52  ;;  %v25_v29 = vld [vmem:[%s575_s0] sm:$0x1]  ;;  %v457_v30 = vpack.c.bf16 %v82_v26, %v78_v25  ;;  %v459_v31 = vpack.c.bf16 %v91_v28, %v87_v27  ;;  %v90_v33 = vld [vmem:[#allocation2 + $0x268] sm:$0xff]  ;;  %v255_v39 = vld [vmem:[#allocation2 + $0x70] sm:$0xff] }
  0x28   :  { %446 = vmatpush1.bf16.msra.mxu1 %v445_v5  ;;  %v86_v32 = vld [vmem:[#allocation2 + $0x240] sm:$0xff]  ;;  %v254_v36 = vld [vmem:[#allocation2 + $0x48] sm:$0xff]  ;;  %v256_v40 = vld [vmem:[#allocation2 + $0x98] sm:$0xff] }
  0x29   :  { %448 = vmatprep.subr.bf16.mxu1 %v447_v7  ;;  %v461_v34 = vpack.c.bf16 %v90_v33, %v86_v32  ;;  %v253_v35 = vld [vmem:[#allocation2 + $0x20] sm:$0xff]  ;;  %v467_v41 = vpack.c.bf16 %v256_v40, %v255_v39  ;;  %v258_v43 = vld [vmem:[#allocation2 + $0xe8] sm:$0xff]  ;;  %v259_v45 = vld [vmem:[#allocation2 + $0x110] sm:$0xff] }
  0x2a   :  { %422 = vmatpush1.bf16.msra.mxu0 %v421_v63  ;;  %v464_v37 = vpack.c.bf16 %v254_v36, %v253_v35  ;;  %v257_v42 = vld [vmem:[#allocation2 + $0xc0] sm:$0xff]  ;;  %v260_v46 = vld [vmem:[#allocation2 + $0x138] sm:$0xff]  ;;  %v262_v49 = vld [vmem:[#allocation2 + $0x188] sm:$0xff] }
  0x2b   :  { %424 = vmatprep.subr.bf16.mxu0 %v423_v1  ;;  %v470_v44 = vpack.c.bf16 %v258_v43, %v257_v42  ;;  %v473_v47 = vpack.c.bf16 %v260_v46, %v259_v45  ;;  %v261_v48 = vld [vmem:[#allocation2 + $0x160] sm:$0xff]  ;;  %v263_v51 = vld [vmem:[#allocation2 + $0x1b0] sm:$0xff]  ;;  %v264_v52 = vld [vmem:[#allocation2 + $0x1d8] sm:$0xff] }
  0x2c   :  { %450 = vmatpush1.bf16.msra.mxu1 %v449_v16  ;;  %v476_v50 = vpack.c.bf16 %v262_v49, %v261_v48  ;;  %v479_v53 = vpack.c.bf16 %v264_v52, %v263_v51  ;;  %v265_v54 = vld [vmem:[#allocation2 + $0x200] sm:$0xff]  ;;  %v266_v55 = vld [vmem:[#allocation2 + $0x228] sm:$0xff]  ;;  %v267_v57 = vld [vmem:[#allocation2 + $0x250] sm:$0xff] }
  0x2d   :  { %452 = vmatprep.subr.bf16.mxu1 %v451_v17  ;;  %v482_v56 = vpack.c.bf16 %v266_v55, %v265_v54  ;;  %v268_v58 = vld [vmem:[#allocation2 + $0x278] sm:$0xff]  ;;  %v26_v10 = vld [vmem:[%s575_s0 + $0x1] sm:$0x1]  ;;  %v27_v16 = vld [vmem:[%s575_s0 + $0x2] sm:$0x1] }
  0x2e   :  { %426 = vmatpush1.bf16.msra.mxu0 %v425_v12  ;;  %v485_v59 = vpack.c.bf16 %v268_v58, %v267_v57 }
  0x2f   :  { %428 = vmatprep.subr.bf16.mxu0 %v427_v13 }
  0x30   :  { %454 = vmatpush1.bf16.msra.mxu1 %v453_v23 }
  0x31   :  { %456 = vmatprep.subr.bf16.mxu1 %v455_v24 }
  0x32   :  { %430 = vmatpush1.bf16.msra.mxu0 %v429_v22 }
  0x33   :  { %463 = vmatprep.subr.bf16.mxu0 %v531_v38 }
  0x34   :  { %458 = vmatpush1.bf16.msra.mxu1 %v457_v30 }
  0x35   :  { %157 = vmatmul.mubr.f32.vlgmr.msra.gmra.mrb[0].mxu0 %v25_v29  ;;  %460 = vmatprep.subr.bf16.mxu1 %v459_v31 }
  0x36   :  { %465 = vmatpush3.bf16.msra.mxu0 %v464_v37  ;;  %396 = vmatprep.mubr.msk.f32.mxu0 %vm532_vm0, %v530_v0 }
  0x37   :  { %466 = vmatprep.subr.bf16.mxu0 %v531_v38 }
  0x38   :  { %462 = vmatpush1.bf16.msra.mxu1 %v461_v34 }
  0x3a   :  { %468 = vmatpush3.bf16.msra.mxu0 %v467_v41 }
  0x3b   :  { %228 = vmatmul.mubr.f32.vlgmr.msra.gmra.mrb[0].mxu1 %v25_v29  ;;  %469 = vmatprep.subr.bf16.mxu0 %v531_v38 }
  0x3e   :  { %471 = vmatpush3.bf16.msra.mxu0 %v470_v44 }
  0x3f   :  { %472 = vmatprep.subr.bf16.mxu0 %v531_v38 }
  0x42   :  { %474 = vmatpush3.bf16.msra.mxu0 %v473_v47 }
  0x43   :  { %475 = vmatprep.subr.bf16.mxu0 %v531_v38 }
  0x46   :  { %477 = vmatpush3.bf16.msra.mxu0 %v476_v50 }
  0x47   :  { %478 = vmatprep.subr.bf16.mxu0 %v531_v38 }
  0x4a   :  { %480 = vmatpush3.bf16.msra.mxu0 %v479_v53 }
  0x4b   :  { %481 = vmatprep.subr.bf16.mxu0 %v531_v38 }
  0x4e   :  { %483 = vmatpush3.bf16.msra.mxu0 %v482_v56 }
  0x4f   :  { %484 = vmatprep.subr.bf16.mxu0 %v531_v38 }
  0x52   :  { %486 = vmatpush3.bf16.msra.mxu0 %v485_v59 }
 0x108   :  { %v158_v60 = vpop.f32.mrb[0].mxu0 }
 0x109   :  { %v345_v61 = vmul.f32 -1.442695, %v158_v60  ;;  %v160_v62 = vpop.f32.mrb[1].mxu0 }
 0x10a   :  { %v346_v63 = vmul.f32 -1.442695, %v160_v62 }
 0x10b   :  { %493 = vpow2.f32 %v345_v61 }
 0x10c   :  { %495 = vpow2.f32 %v346_v63 }
 0x10e   :  { %v229_v1 = vpop.f32.mrb[0].mxu1 }
 0x10f   :  { %v231_v2 = vpop.f32.mrb[1].mxu1 }
 0x115   :  { %v494_v3 = vpop.eup %493 }
 0x116   :  { %v237_v4 = vadd.f32 1.0, %v494_v3  ;;  %v496_v0 = vpop.eup %495 }
 0x117   :  { %v243_v5 = vadd.f32 1.0, %v496_v0 }
 0x118   :  { %497 = vrcp.f32 %v237_v4 }
 0x119   :  { %499 = vrcp.f32 %v243_v5 }
 0x122   :  { %v498_v6 = vpop.eup %497 }
 0x123   :  { %v246_v7 = vmul.f32 %v498_v6, %v231_v2  ;;  %v500_v9 = vpop.eup %499 }
 0x124   :  { %v249_v11 = vsub.f32 1.0, %v500_v9  ;;  %v251_v14 = vmul.f32 %v500_v9, %v26_v10 }
 0x125   :  { %v247_v8 = vadd.f32 %v246_v7, %v229_v1 }
 0x127   :  { %501 = vtanh.f32 %v247_v8 }
 0x131   :  { %v502_v12 = vpop.eup %501 }
 0x132   :  { %v250_v13 = vmul.f32 %v502_v12, %v249_v11 }
 0x134   :  { %v252_v15 = vadd.f32 %v251_v14, %v250_v13 }
 0x136   :  { %397 = vmatmul.mubr.f32.vlgmr.msra.gmra.mrb[2].mxu0 %v252_v15 }
 0x209   :  { %v335_v17 = vpop.f32.mrb[2].mxu0 }
 0x20a   :  { %v336_v18 = vadd.f32 %v335_v17, %v27_v16  ;;  %v398_v19 = vpop.f32.mrb[3].mxu0 }
 0x20c   :  { %339 = vst [vmem:[%s577_s2] sm:$0x1] %v336_v18 }
 0x20d   :  { %344 = vsyncpa [#allocation3], 1 }

</bundles_post_ra>
